<compile_context>
chip_gen: v7x
topology: tpu7x:2x2x1
jax: 0.10.0
libtpu: 0.0.40
codegen_flags: <defaults>
</compile_context>

<pallas_src>
import numpy as np
import jax
import jax.numpy as jnp
from jax.experimental import pallas as pl
from jax.experimental.pallas import tpu as pltpu


def _zero_kernel(x_ref, o_ref):
    # x_ref: (TB, W) lane-aligned input window; o_ref: (TB, dim_out).
    # Scalar-0 multiply keeps IEEE semantics (0*NaN/Inf -> NaN), matching
    # PyTorch's `0 * x` for exactly the columns that survive the slice.
    d = o_ref.shape[-1]
    o_ref[...] = x_ref[:, :d] * jnp.zeros((), dtype=x_ref.dtype)


def zero_module_forward(x, dim_out, *, assume_finite=False):
    """Equivalent of ZeroModule(dim_in, dim_out)(x) for NCHW (or any) input."""
    b = x.shape[0]
    x_flat = x.reshape(b, -1)                 # glue: x.view(B, -1)
    dim_in = x_flat.shape[1]
    assert dim_in >= dim_out, "ZeroModule requires dim_in >= dim_out"

    if assume_finite:
        # Semantics decision (see review): if downstream code treats the
        # output as exact zeros, never touch x at all -> zero HBM traffic.
        return jnp.zeros((b, dim_out), dtype=x_flat.dtype)

    # Lane-aligned column window covering dim_out (only columns ever read).
    w = min(pl.cdiv(dim_out, 128) * 128, dim_in)

    # Sublane packing factor: 8 for 32-bit, 16 for 16-bit, 32 for 8-bit dtypes.
    itemsize = np.dtype(x_flat.dtype).itemsize
    pack = 8 * max(1, 4 // itemsize)

    # Row tile: keep 2x(in tile) + 2x(out tile) under ~24 MiB (headroom inside
    # the explicit 32 MiB scoped-VMEM limit below), so each grid step streams
    # multi-MiB tiles and the ~0.35 us fixed per-step overhead is negligible.
    vmem_budget = 24 * 1024 * 1024
    max_rows = vmem_budget // max(1, 2 * (w + dim_out) * itemsize)
    max_rows = max(pack, (max_rows // pack) * pack)

    if b > max_rows:
        tb = max_rows
    elif b >= 2 * pack:
        # Force >=2 grid tiles so both TensorCores stream in parallel on v7x.
        half = pl.cdiv(b, 2)
        tb = min(max_rows, pl.cdiv(half, pack) * pack)
    else:
        tb = b                                # full batch block: layout-legal

    nb = pl.cdiv(b, tb)

    return pl.pallas_call(
        _zero_kernel,
        out_shape=jax.ShapeDtypeStruct((b, dim_out), x_flat.dtype),
        grid=(nb,),
        in_specs=[pl.BlockSpec((tb, w), lambda i: (i, 0))],
        out_specs=pl.BlockSpec((tb, dim_out), lambda i: (i, 0)),
        compiler_params=pltpu.CompilerParams(
            dimension_semantics=("parallel",),     # shard batch tiles over TCs
            vmem_limit_bytes=32 * 1024 * 1024,     # explicit: v5e default is 16 MiB
        ),
    )(x_flat)


if __name__ == "__main__":
    key = jax.random.PRNGKey(0)
    # Small NCHW input: B=2, C=4, H=16, W=16  -> dim_in = 4*16*16 = 1024
    x = jax.random.normal(key, (2, 4, 16, 16), dtype=jnp.float32)
    dim_out = 32

    y = zero_module_forward(x, dim_out)
    y = jax.block_until_ready(y)

    # Reference (pure JAX): matches PyTorch (0 * x.view(B,-1))[:, :dim_out].
    ref = (0.0 * x.reshape(x.shape[0], -1))[:, :dim_out]
    assert y.shape == (2, dim_out), y.shape
    assert y.dtype == x.dtype, y.dtype
    assert jnp.allclose(y, ref), "mismatch vs reference"

    # Also exercise a batch large enough to trigger the >=2-tile (megacore)
    # and multi-row-tile paths, plus a bf16 input for the pack-factor path.
    xb = jax.random.normal(key, (64, 4, 16, 16), dtype=jnp.bfloat16)
    yb = jax.block_until_ready(zero_module_forward(xb, dim_out))
    refb = (jnp.zeros((), jnp.bfloat16) * xb.reshape(64, -1))[:, :dim_out]
    assert yb.shape == (64, dim_out) and yb.dtype == xb.dtype
    assert jnp.allclose(yb.astype(jnp.float32), refb.astype(jnp.float32))

    print("KERNEL_OK")
</pallas_src>

<mosaic_0001>
module attributes {stable_mosaic.version = 11 : i64} {
  func.func @_zero_kernel(%arg0: i32, %arg1: memref<2x128xf32, #tpu.memory_space<vmem>>, %arg2: memref<2x32xf32, #tpu.memory_space<vmem>>) attributes {dimension_semantics = [#tpu.dimension_semantics<parallel>], iteration_bounds = array<i64: 1>, scalar_prefetch = 0 : i64, scratch_operands = 0 : i64, tpu.core_type = #tpu.core_type<tc>, window_params = [{transform_indices = @transform_0, window_bounds = array<i64: 2, 128>}, {transform_indices = @transform_1, window_bounds = array<i64: 2, 32>}]} {
    %c0 = arith.constant 0 : index
    %c0_0 = arith.constant 0 : index
    %0 = vector.load %arg1[%c0, %c0_0] : memref<2x128xf32, #tpu.memory_space<vmem>>, vector<2x32xf32>
    %cst = arith.constant 0.000000e+00 : f32
    %1 = vector.broadcast %cst : f32 to vector<2x32xf32>
    %2 = arith.mulf %0, %1 : vector<2x32xf32>
    %c0_1 = arith.constant 0 : index
    %c0_2 = arith.constant 0 : index
    %3 = vector.load %arg2[%c0_1, %c0_2] : memref<2x32xf32, #tpu.memory_space<vmem>>, vector<2x32xf32>
    tpu.vector_store %arg2[%c0_1, %c0_2], %2 {strides = array<i32>} : memref<2x32xf32, #tpu.memory_space<vmem>>, vector<2x32xf32>,
    return
  }
  func.func @transform_0(%arg0: i32) -> (i32, i32) {
    %c0_i32 = arith.constant 0 : i32
    %c0_i32_0 = arith.constant 0 : i32
    return %arg0, %c0_i32 : i32, i32
  }
  func.func @transform_1(%arg0: i32) -> (i32, i32) {
    %c0_i32 = arith.constant 0 : i32
    %c0_i32_0 = arith.constant 0 : i32
    return %arg0, %c0_i32 : i32, i32
  }
}

</mosaic_0001>

<bundles_post_ra>
// kernel: tpu_custom_call.1
= control target key start
LH: loop header
LB: loop body
LE: loop exit
PB: predicated region body
PF: predicated region fallthrough
CT: control target
= control target key end

     0   :  { %6 = vsyncpa [#allocation3], 0  ;;  %s129_s0 = inlined_call_operand.hbm [shape: f32[2,1024], index: 0, kind: input, shape index: {}]   ;;  %s130_s1 = inlined_call_operand.hbm [shape: f32[2,32], index: 1, kind: output, shape index: {}]  }
   0x1   :  { %7 = vsyncpa [#allocation4], 0  ;;  %s90_s6 = smov [#allocation2]   ;;  %s42_s10 = scalar_lea.hbm %s129_s0, 32 }
   0x2   :  { %s14_s7 = sshll.u32 %s90_s6, 4  ;;  %p43_p0 = scmp.ne.s32.totalorder %s129_s0, %s42_s10  ;;  %s15_s7 = int_to_ptr.vmem [resolvable:$true] %s14_s7 }
   0x3   :  { %s44_s15 = scalar_lea.hbm %s129_s0, 256  ;;  %p46_p2 = scmp.lt.u32.totalorder %s42_s10, %s129_s0 }
   0x4   :  { %p45_p1 = scmp.lt.u32.totalorder %s44_s15, %s42_s10 }
   0x6   :  { %p47_p3 = por %p46_p2, %p45_p1 }
   0x8   :  { %p48_p4 = pnand %p47_p3, %p43_p0 }
   0xa   :  { %51 = shalt.err (!%p48_p4)
}
   0xb   :  { %s52_s18 = scalar_lea.vmem %s15_s7, 32  ;;  %p57_p6 = scmp.lt.s32.totalorder %s15_s7, %s15_s7 }
   0xc   :  { %p53_p5 = scmp.ne.s32.totalorder %s15_s7, %s52_s18  ;;  %p58_p7 = scmp.lt.s32.totalorder %s52_s18, %s52_s18 }
   0xe   :  { %p59_p8 = por %p58_p7, %p57_p6 }
  0x10   :  { %p60_p9 = pnand %p59_p8, %p53_p5 }
  0x12   :  { %63 = shalt.err (!%p60_p9)
}
  0x13   :  { %17 = dma.hbm_to_vmem [thread:$0]  %s129_s0, 32, %s15_s7, [#allocation3]  }
  0x14   :  { %86 = dma.done.wait [#allocation3], 32  }
  0x15   :  { %87 = vsyncadd [#allocation3], 4294967264  ;;  %s91_s21 = smov [#allocation5]   ;;  %v21_v0 = vld [vmem:[#allocation2] sm:$0x3]  ;;  %vm23_vm0 = vcmask 254976  }
  0x16   :  { %s31_s22 = sshll.u32 %s91_s21, 4  ;;  %v22_v1 = vmul.f32 0.0, %v21_v0  ;;  %s32_s22 = int_to_ptr.vmem [resolvable:$true] %s31_s22 }
  0x17   :  { %s64_s23 = scalar_lea.vmem %s32_s22, 32  ;;  %p69_p11 = scmp.lt.s32.totalorder %s32_s22, %s32_s22 }
  0x18   :  { %24 = vst.msk [vmem:[#allocation5] sm:$0x3] %vm23_vm0, %v22_v1  ;;  %p65_p10 = scmp.ne.s32.totalorder %s32_s22, %s64_s23  ;;  %p70_p12 = scmp.lt.s32.totalorder %s64_s23, %s64_s23 }
  0x1a   :  { %p71_p13 = por %p70_p12, %p69_p11 }
  0x1c   :  { %p72_p0 = pnand %p71_p13, %p65_p10 }
  0x1e   :  { %75 = shalt.err (!%p72_p0)
}
  0x1f   :  { %s76_s0 = scalar_lea.hbm %s130_s1, 32 }
  0x20   :  { %p77_p1 = scmp.ne.s32.totalorder %s130_s1, %s76_s0  ;;  %p80_p2 = scmp.lt.u32.totalorder %s76_s0, %s130_s1 }
  0x22   :  { %p82_p3 = pnand %p80_p2, %p77_p1 }
  0x24   :  { %85 = shalt.err (!%p82_p3)
}
  0x25   :  { %34 = dma.vmem_to_hbm [thread:$0]  %s32_s22, 32, %s130_s1, [#allocation4]  }
  0x26   :  { %88 = dma.done.wait [#allocation4], 32  }
  0x27   :  { %89 = vsyncadd [#allocation4], 4294967264 }
  0x28   :  { %38 = vsyncpa [#allocation3], 1 }
  0x29   :  { %39 = vsyncpa [#allocation4], 1 }

</bundles_post_ra>
